<compile_context>
chip_gen: v7x
topology: tpu7x:2x2x1
jax: 0.10.0
libtpu: 0.0.40
codegen_flags: <defaults>
</compile_context>

<pallas_src>
import functools

import jax
import jax.numpy as jnp
from jax import lax
from jax.experimental import pallas as pl
from jax.experimental.pallas import tpu as pltpu

_LANE = 128
_VMEM_BUDGET = 40 * 1024 * 1024      # per-step buffer cap: safe on v7x's 64 MiB VMEM
                                     # (v5e/v6e could raise this to ~96 MiB for bigger tiles)
_VMEM_LIMIT_CAP = 64 * 1024 * 1024   # never request more scoped VMEM than v7x has


def _round_up(x, m):
    return (x + m - 1) // m * m


def _step_vmem_bytes(c_in, c_out, k, halo, t_tile, itx, ito, itc, n_main_buf):
    """Rough per-grid-step VMEM footprint (pipelined blocks + scratch + temporaries)."""
    b = n_main_buf * c_in * t_tile * itx                   # pipelined main-input blocks
    if halo:
        b += 2 * c_in * halo * itx                         # pipelined halo blocks
        b += c_in * (halo + t_tile) * itc                  # causal-window scratch
    b += 2 * c_out * t_tile * ito                          # pipelined output blocks
    b += 2 * (k * c_out * c_in * itc + c_out * 4)          # resident weights + bias
    b += 2 * c_out * t_tile * 4 + c_in * t_tile * itc      # acc / tap temporaries (rough)
    return b


def _causal_conv1d_kernel(*refs, kernel_size, dilation, pad, halo, t_tile, multi_tile):
    """General (K > 1) causal conv kernel.

    refs (multi_tile=True):  x_main, x_halo, w, b, out, win_scratch
    refs (multi_tile=False): x_main,         w, b, out, win_scratch
      x_main: (1, C_in, t_tile)    native input dtype, current time tile
      x_halo: (1, C_in, halo)      trailing `halo` columns of the previous tile
      w:      (K, C_out, C_in)     compute dtype, VMEM-resident across the grid
      b:      (C_out, 1)           f32 bias
      out:    (1, C_out, t_tile)   output tile (lane axis = time -> dense stores)
      win:    (C_in, halo+t_tile)  compute-dtype VMEM scratch (the causal window)
    """
    if multi_tile:
        x_ref, halo_ref, w_ref, b_ref, o_ref, win_ref = refs
    else:
        x_ref, w_ref, b_ref, o_ref, win_ref = refs
        halo_ref = None
    t = pl.program_id(1)

    # ---- build the causal window once per step in VMEM scratch (no concatenates) ----
    if multi_tile:
        @pl.when(t == 0)
        def _():
            # No real left context before time 0 -> zeros.  Two-path select (NOT a
            # multiply) so NaN/Inf in the clamped halo block cannot leak into outputs.
            win_ref[:, :halo] = jnp.zeros((win_ref.shape[0], halo), win_ref.dtype)

        @pl.when(t > 0)
        def _():
            win_ref[:, :halo] = halo_ref[0].astype(win_ref.dtype)
    else:
        win_ref[:, :halo] = jnp.zeros((win_ref.shape[0], halo), win_ref.dtype)

    # Per-tile cast to the compute dtype (no wrapper-side HBM astype pass).
    win_ref[:, halo:halo + t_tile] = x_ref[0].astype(win_ref.dtype)

    # ---- K accumulating MXU dots straight out of the window scratch ----
    acc = None
    for k in range(kernel_size):                       # K is small and static
        start = halo - pad + k * dilation              # static python int
        tap = win_ref[:, start:start + t_tile]         # (C_in, t_tile), compute dtype
        d = jnp.dot(w_ref[k], tap, preferred_element_type=jnp.float32)
        acc = d if acc is None else acc + d
    o_ref[0] = (acc + b_ref[...]).astype(o_ref.dtype)  # f32 bias add / epilogue


def _causal_conv1d_k1_kernel(x_ref, w_ref, b_ref, o_ref, *, compute_dtype):
    """pad == 0 (K == 1) fast path: plain 1x1 conv — no halo input, no window scratch."""
    x = x_ref[0].astype(compute_dtype)                              # (C_in, t_tile)
    acc = jnp.dot(w_ref[0], x, preferred_element_type=jnp.float32)  # (C_out, t_tile) f32
    o_ref[0] = (acc + b_ref[...]).astype(o_ref.dtype)


def causal_conv1d(x_ncl, weight_oik, bias=None, *, dilation=1,
                  compute_dtype=None, time_tile=2048, input_buffer_count=None):
    """Causal dilated conv1d matching the PyTorch CausalConv1d forward.

    x_ncl:      (B, C_in, T)      input, PyTorch NCL layout (consumed in its native dtype)
    weight_oik: (C_out, C_in, K)  nn.Conv1d weight layout
    bias:       (C_out,) or None
    compute_dtype: MXU operand dtype (default: x dtype).  bfloat16 recommended on
        v6e/v7x (halves MXU operand width); accumulation, bias add and the final cast
        always stay f32 / output dtype.
    time_tile:  requested time-tile width (lanes).  Sweep 2048-4096 on hardware; keep
        it >= 4 * halo for deep-dilation layers to amortize the halo re-fetch.
    input_buffer_count: pipeline depth for the main-input BlockSpec (None = default
        double buffering).  TODO(synk): sweep pl.Buffered(3) vs 2 on v7x hardware.
    Returns (B, C_out, T) in x_ncl.dtype.
    """
    B, C_in, T = (int(s) for s in x_ncl.shape)
    C_out, _, K = (int(s) for s in weight_oik.shape)
    assert dilation >= 1
    pad = (K - 1) * dilation
    out_dtype = x_ncl.dtype
    if compute_dtype is None:
        compute_dtype = x_ncl.dtype
    compute_dtype = jnp.dtype(compute_dtype)

    # Tap-major weights (K, C_out, C_in): w[k] is the (C_out, C_in) matrix for tap k.
    # Tiny, built once; for best MXU fill keep C_in % 8 (f32) / % 16 (bf16) and C_out >= 128.
    w = jnp.transpose(weight_oik, (2, 0, 1)).astype(compute_dtype)
    if bias is None:
        bias = jnp.zeros((C_out,), jnp.float32)
    bias2d = jnp.reshape(bias, (C_out, 1)).astype(jnp.float32)

    itx = jnp.dtype(x_ncl.dtype).itemsize
    ito = jnp.dtype(out_dtype).itemsize
    itc = compute_dtype.itemsize
    n_main_buf = 2 if input_buffer_count is None else int(input_buffer_count)

    # ---- time tiling: lane axis stays time -> 128-dense loads/stores ----
    halo = _round_up(pad, _LANE) if pad > 0 else 0       # causal left-context width
    quant = halo if halo else _LANE                       # halo blocks must tile the time tile
    t_tile = _round_up(max(min(int(time_tile), max(T, _LANE)), _LANE), quant)
    t_tile = min(t_tile, _round_up(max(T, _LANE), quant))
    # Keep the per-step buffer footprint v7x-safe; derive the VMEM limit from it.
    while t_tile > quant and _step_vmem_bytes(
            C_in, C_out, K, halo, t_tile, itx, ito, itc, n_main_buf) > _VMEM_BUDGET:
        t_tile = max(quant, _round_up(t_tile // 2, quant))
    if t_tile >= T:
        t_tile = T            # single full-extent block: no boundary masking at all
    nt = -(-T // t_tile)
    multi_tile = nt > 1

    vmem_est = _step_vmem_bytes(C_in, C_out, K, halo, t_tile, itx, ito, itc, n_main_buf)
    vmem_limit = max(32 * 1024 * 1024,
                     min(_VMEM_LIMIT_CAP, int(1.25 * vmem_est) + (2 << 20)))

    main_kwargs = {}
    if input_buffer_count is not None and hasattr(pl, "Buffered"):
        main_kwargs["pipeline_mode"] = pl.Buffered(int(input_buffer_count))
    main_spec = pl.BlockSpec((1, C_in, t_tile), lambda b, t: (b, 0, t), **main_kwargs)
    w_spec = pl.BlockSpec((K, C_out, C_in), lambda b, t: (0, 0, 0))   # VMEM-resident
    b_spec = pl.BlockSpec((C_out, 1), lambda b, t: (0, 0))
    out_spec = pl.BlockSpec((1, C_out, t_tile), lambda b, t: (b, 0, t))

    if pad == 0:
        # ---- K == 1 fast path: no halo input, no window scratch ----
        kernel = functools.partial(_causal_conv1d_k1_kernel, compute_dtype=compute_dtype)
        in_specs = [main_spec, w_spec, b_spec]
        args = [x_ncl, w, bias2d]
        scratch_shapes = []
    else:
        kernel = functools.partial(
            _causal_conv1d_kernel, kernel_size=K, dilation=dilation, pad=pad,
            halo=halo, t_tile=t_tile, multi_tile=multi_tile)
        in_specs = [main_spec]
        args = [x_ncl]
        if multi_tile:
            r = t_tile // halo        # halo-sized blocks per time tile (t_tile % halo == 0)
            in_specs.append(
                pl.BlockSpec((1, C_in, halo),
                             lambda b, t: (b, 0, jnp.maximum(t * r - 1, 0))))
            args.append(x_ncl)        # second (read-only) view of the same input
        in_specs += [w_spec, b_spec]
        args += [w, bias2d]
        scratch_shapes = [pltpu.VMEM((C_in, halo + t_tile), compute_dtype)]

    cost = pl.CostEstimate(
        flops=2 * B * C_out * K * C_in * T,
        transcendentals=0,
        bytes_accessed=B * T * (C_in * itx + C_out * ito) + K * C_out * C_in * itc,
    )

    return pl.pallas_call(
        kernel,
        out_shape=jax.ShapeDtypeStruct((B, C_out, T), out_dtype),
        grid_spec=pltpu.PrefetchScalarGridSpec(
            num_scalar_prefetch=0,
            grid=(B, nt),
            in_specs=in_specs,
            out_specs=out_spec,
            scratch_shapes=scratch_shapes,
        ),
        compiler_params=pltpu.CompilerParams(
            dimension_semantics=("parallel", "parallel"),   # B and time tiles independent
            vmem_limit_bytes=vmem_limit,
        ),
        cost_estimate=cost,
    )(*args)


def _reference_causal_conv1d(x_ncl, weight_oik, bias, *, dilation):
    """Pure-JAX reference matching the PyTorch module exactly."""
    K = weight_oik.shape[-1]
    pad = (K - 1) * dilation
    y = lax.conv_general_dilated(
        x_ncl, weight_oik,
        window_strides=(1,),
        padding=[(pad, pad)],
        rhs_dilation=(dilation,),
        dimension_numbers=("NCH", "OIH", "NCH"),
    )
    y = y + bias[None, :, None]
    if pad != 0:
        y = y[:, :, :-pad]
    return y


if __name__ == "__main__":
    key = jax.random.PRNGKey(0)
    k_x, k_w, k_b, k_x2, k_x3, k_w3, k_b3, k_w1, k_b1 = jax.random.split(key, 9)

    # ---- 1) small case consistent with the module (B=2, C_in=4, C_out=6, T=16) ----
    B, C_in, C_out, T = 2, 4, 6, 16
    K, dilation = 3, 2
    x = jax.random.normal(k_x, (B, C_in, T), dtype=jnp.float32)
    w_oik = jax.random.normal(k_w, (C_out, C_in, K), dtype=jnp.float32) * 0.1
    bias = jax.random.normal(k_b, (C_out,), dtype=jnp.float32) * 0.1

    ref = _reference_causal_conv1d(x, w_oik, bias, dilation=dilation)
    out = jax.block_until_ready(causal_conv1d(x, w_oik, bias, dilation=dilation))
    assert out.shape == (B, C_out, T) and out.dtype == x.dtype, (out.shape, out.dtype)
    assert jnp.allclose(out, ref, atol=1e-4, rtol=1e-4), "f32 mismatch vs reference"

    # bf16 MXU operands (recommended on v6e/v7x), f32 accumulation -> looser tolerance.
    out_bf16 = jax.block_until_ready(
        causal_conv1d(x, w_oik, bias, dilation=dilation, compute_dtype=jnp.bfloat16))
    assert jnp.allclose(out_bf16, ref, atol=3e-2, rtol=3e-2), "bf16 mismatch vs reference"

    # ---- 2) multi-tile, T NOT divisible by the tile: cross-tile causal halo plus a
    #         masked boundary block (no wrapper pad/slice) ----
    T2, dil2 = 400, 8                      # pad = 16 -> halo = 128; tiles 128/128/128/16
    x2 = jax.random.normal(k_x2, (B, C_in, T2), dtype=jnp.float32)
    ref2 = _reference_causal_conv1d(x2, w_oik, bias, dilation=dil2)
    out2 = jax.block_until_ready(
        causal_conv1d(x2, w_oik, bias, dilation=dil2, time_tile=128))
    assert out2.shape == (B, C_out, T2), out2.shape
    assert jnp.allclose(out2, ref2, atol=1e-4, rtol=1e-4), "multi-tile mismatch vs reference"

    # ---- 3) larger dilation: pad > 128 so halo = 256 and the tile is halo-quantized ----
    C_in3, C_out3, T3, K3, dil3 = 8, 16, 600, 3, 96      # pad = 192 -> halo = 256
    x3 = jax.random.normal(k_x3, (B, C_in3, T3), dtype=jnp.float32)
    w3 = jax.random.normal(k_w3, (C_out3, C_in3, K3), dtype=jnp.float32) * 0.1
    b3 = jax.random.normal(k_b3, (C_out3,), dtype=jnp.float32) * 0.1
    ref3 = _reference_causal_conv1d(x3, w3, b3, dilation=dil3)
    out3 = jax.block_until_ready(
        causal_conv1d(x3, w3, b3, dilation=dil3, time_tile=256))
    assert jnp.allclose(out3, ref3, atol=1e-4, rtol=1e-4), "large-dilation mismatch vs reference"

    # ---- 4) K == 1 fast path (pad == 0): no halo input, no window scratch ----
    w1 = jax.random.normal(k_w1, (C_out, C_in, 1), dtype=jnp.float32) * 0.1
    b1 = jax.random.normal(k_b1, (C_out,), dtype=jnp.float32) * 0.1
    ref1 = _reference_causal_conv1d(x2, w1, b1, dilation=1)
    out1 = jax.block_until_ready(causal_conv1d(x2, w1, b1, dilation=1, time_tile=128))
    assert jnp.allclose(out1, ref1, atol=1e-4, rtol=1e-4), "K=1 fast path mismatch vs reference"

    print("KERNEL_OK")
</pallas_src>

<mosaic_0001>
module attributes {stable_mosaic.version = 11 : i64} {
  func.func @_causal_conv1d_kernel(%arg0: i32, %arg1: i32, %arg2: memref<1x4x16xf32, #tpu.memory_space<vmem>>, %arg3: memref<3x6x4xf32, #tpu.memory_space<vmem>>, %arg4: memref<6x1xf32, #tpu.memory_space<vmem>>, %arg5: memref<1x6x16xf32, #tpu.memory_space<vmem>>, %arg6: memref<4x144xf32, #tpu.memory_space<vmem>>) attributes {dimension_semantics = [#tpu.dimension_semantics<parallel>, #tpu.dimension_semantics<parallel>], iteration_bounds = array<i64: 2, 1>, scalar_prefetch = 0 : i64, scratch_operands = 1 : i64, tpu.core_type = #tpu.core_type<tc>, window_params = [{transform_indices = @transform_0, window_bounds = array<i64: 1, 4, 16>}, {pipeline_mode = #tpu.pipeline_mode<synchronous>, transform_indices = @transform_1, window_bounds = array<i64: 3, 6, 4>}, {pipeline_mode = #tpu.pipeline_mode<synchronous>, transform_indices = @transform_2, window_bounds = array<i64: 6, 1>}, {transform_indices = @transform_3, window_bounds = array<i64: 1, 6, 16>}]} {
    %cst = arith.constant 0.000000e+00 : f32
    %0 = vector.broadcast %cst : f32 to vector<4x128xf32>
    %c0 = arith.constant 0 : index
    %c0_0 = arith.constant 0 : index
    %1 = vector.load %arg6[%c0, %c0_0] : memref<4x144xf32, #tpu.memory_space<vmem>>, vector<4x128xf32>
    tpu.vector_store %arg6[%c0, %c0_0], %0 {strides = array<i32>} : memref<4x144xf32, #tpu.memory_space<vmem>>, vector<4x128xf32>,
    %c0_1 = arith.constant 0 : index
    %c0_2 = arith.constant 0 : index
    %c0_3 = arith.constant 0 : index
    %2 = vector.load %arg2[%c0_1, %c0_2, %c0_3] : memref<1x4x16xf32, #tpu.memory_space<vmem>>, vector<1x4x16xf32>
    %3 = vector.shape_cast %2 : vector<1x4x16xf32> to vector<4x16xf32>
    %c0_4 = arith.constant 0 : index
    %c128 = arith.constant 128 : index
    %4 = vector.load %arg6[%c0_4, %c128] : memref<4x144xf32, #tpu.memory_space<vmem>>, vector<4x16xf32>
    tpu.vector_store %arg6[%c0_4, %c128], %3 {strides = array<i32>} : memref<4x144xf32, #tpu.memory_space<vmem>>, vector<4x16xf32>,
    %c0_5 = arith.constant 0 : index
    %c124 = arith.constant 124 : index
    %5 = vector.load %arg6[%c0_5, %c124] : memref<4x144xf32, #tpu.memory_space<vmem>>, vector<4x16xf32>
    %c0_6 = arith.constant 0 : index
    %c0_7 = arith.constant 0 : index
    %c0_8 = arith.constant 0 : index
    %6 = vector.load %arg3[%c0_6, %c0_7, %c0_8] : memref<3x6x4xf32, #tpu.memory_space<vmem>>, vector<1x6x4xf32>
    %7 = vector.shape_cast %6 : vector<1x6x4xf32> to vector<6x4xf32>
    %cst_9 = arith.constant dense<0.000000e+00> : vector<6x16xf32>
    %8 = tpu.matmul %7, %5, %cst_9 {dimension_numbers = #tpu.dot_dimension_numbers<[1], [0], [0], [1], [0, 0, 1, 1], [], []>} : vector<6x4xf32>, vector<4x16xf32>, vector<6x16xf32> -> vector<6x16xf32>
    %c0_10 = arith.constant 0 : index
    %c126 = arith.constant 126 : index
    %9 = vector.load %arg6[%c0_10, %c126] : memref<4x144xf32, #tpu.memory_space<vmem>>, vector<4x16xf32>
    %c1 = arith.constant 1 : index
    %c0_11 = arith.constant 0 : index
    %c0_12 = arith.constant 0 : index
    %10 = vector.load %arg3[%c1, %c0_11, %c0_12] : memref<3x6x4xf32, #tpu.memory_space<vmem>>, vector<1x6x4xf32>
    %11 = vector.shape_cast %10 : vector<1x6x4xf32> to vector<6x4xf32>
    %cst_13 = arith.constant dense<0.000000e+00> : vector<6x16xf32>
    %12 = tpu.matmul %11, %9, %cst_13 {dimension_numbers = #tpu.dot_dimension_numbers<[1], [0], [0], [1], [0, 0, 1, 1], [], []>} : vector<6x4xf32>, vector<4x16xf32>, vector<6x16xf32> -> vector<6x16xf32>
    %13 = arith.addf %8, %12 : vector<6x16xf32>
    %c0_14 = arith.constant 0 : index
    %c128_15 = arith.constant 128 : index
    %14 = vector.load %arg6[%c0_14, %c128_15] : memref<4x144xf32, #tpu.memory_space<vmem>>, vector<4x16xf32>
    %c2 = arith.constant 2 : index
    %c0_16 = arith.constant 0 : index
    %c0_17 = arith.constant 0 : index
    %15 = vector.load %arg3[%c2, %c0_16, %c0_17] : memref<3x6x4xf32, #tpu.memory_space<vmem>>, vector<1x6x4xf32>
    %16 = vector.shape_cast %15 : vector<1x6x4xf32> to vector<6x4xf32>
    %cst_18 = arith.constant dense<0.000000e+00> : vector<6x16xf32>
    %17 = tpu.matmul %16, %14, %cst_18 {dimension_numbers = #tpu.dot_dimension_numbers<[1], [0], [0], [1], [0, 0, 1, 1], [], []>} : vector<6x4xf32>, vector<4x16xf32>, vector<6x16xf32> -> vector<6x16xf32>
    %18 = arith.addf %13, %17 : vector<6x16xf32>
    %c0_19 = arith.constant 0 : index
    %c0_20 = arith.constant 0 : index
    %19 = vector.load %arg4[%c0_19, %c0_20] : memref<6x1xf32, #tpu.memory_space<vmem>>, vector<6x1xf32>
    %20 = vector.broadcast %19 : vector<6x1xf32> to vector<6x16xf32>
    %21 = arith.addf %18, %20 : vector<6x16xf32>
    %c0_21 = arith.constant 0 : index
    %c0_22 = arith.constant 0 : index
    %c0_23 = arith.constant 0 : index
    %22 = vector.load %arg5[%c0_21, %c0_22, %c0_23] : memref<1x6x16xf32, #tpu.memory_space<vmem>>, vector<1x6x16xf32>
    %23 = vector.shape_cast %22 : vector<1x6x16xf32> to vector<6x16xf32>
    %24 = vector.shape_cast %21 : vector<6x16xf32> to vector<1x6x16xf32>
    tpu.vector_store %arg5[%c0_21, %c0_22, %c0_23], %24 {strides = array<i32>} : memref<1x6x16xf32, #tpu.memory_space<vmem>>, vector<1x6x16xf32>,
    return
  }
  func.func @transform_0(%arg0: i32, %arg1: i32) -> (i32, i32, i32) {
    %c0_i32 = arith.constant 0 : i32
    %c0_i32_0 = arith.constant 0 : i32
    return %arg0, %c0_i32, %arg1 : i32, i32, i32
  }
  func.func @transform_1(%arg0: i32, %arg1: i32) -> (i32, i32, i32) {
    %c0_i32 = arith.constant 0 : i32
    %c0_i32_0 = arith.constant 0 : i32
    %c0_i32_1 = arith.constant 0 : i32
    %c0_i32_2 = arith.constant 0 : i32
    return %c0_i32, %c0_i32_0, %c0_i32_1 : i32, i32, i32
  }
  func.func @transform_2(%arg0: i32, %arg1: i32) -> (i32, i32) {
    %c0_i32 = arith.constant 0 : i32
    %c0_i32_0 = arith.constant 0 : i32
    %c0_i32_1 = arith.constant 0 : i32
    return %c0_i32, %c0_i32_0 : i32, i32
  }
  func.func @transform_3(%arg0: i32, %arg1: i32) -> (i32, i32, i32) {
    %c0_i32 = arith.constant 0 : i32
    %c0_i32_0 = arith.constant 0 : i32
    return %arg0, %c0_i32, %arg1 : i32, i32, i32
  }
}

</mosaic_0001>

<bundles_post_ra>
// kernel: tpu_custom_call.1
= control target key start
LH: loop header
LB: loop body
LE: loop exit
PB: predicated region body
PF: predicated region fallthrough
CT: control target
= control target key end

     0   :  { %s651_s12 = smov 0   ;;  %s653_s13 = smov 0   ;;  %s707_s0 = inlined_call_operand.vmem [shape: f32[2,4,16], index: 0, kind: input, shape index: {}]   ;;  %s708_s1 = inlined_call_operand.vmem [shape: f32[3,6,4], index: 1, kind: input, shape index: {}]   ;;  %s709_s2 = inlined_call_operand.vmem [shape: f32[6,1], index: 2, kind: input, shape index: {}]   ;;  %s710_s3 = inlined_call_operand.vmem [shape: f32[2,6,16], index: 3, kind: output, shape index: {}]  }
   0x1   :  { %s655_s14 = smov 0  }
   0x2 LB: > { %s25_s15 = sadd.s32 1, %s620_s13  ;;  %p537_p0 = scmp.ge.s32.totalorder %s624_s14, 1  ;;  %s624_s14 = sphi %s655_s14, %s13_s14   ;;  %s620_s13 = sphi %s653_s13, %s712_s13   ;;  %s616_s12 = sphi %s651_s12, %s711_s12  }
   0x3   : > { %p27_p1 = scmp.ge.s32.totalorder %s25_s15, 2  ;;  %p155_p2 = scmp.lt.s32.totalorder %s624_s14, 3 }
   0x5   : > { %s714_s15 = smov (%p27_p1, %s25_s15), 0  ;;  %p156_p3 = pnand %p537_p0, %p155_p2 }
   0x6   : > { %p183_p4 = scmp.lt.s32.totalorder (!%p156_p3), %s616_s12, 1  ;;  %v626_v0 = vmov (!%p156_p3), 0.0   ;;  %vm199_vm0 = vcmask (!%p156_p3), 125952   ;;  %vm627_vm1 = vmmov (!%p156_p3), 0   ;;  %v628_v2 = vmov (!%p156_p3), 0   ;;  %s629_s20 = smov (!%p156_p3), 4  }
   0x7   : > { %159 = sbr.rel (%p156_p3) target bundleno = 368 (0x170), region = 32  ;;  %197 = vst [vmem:[#allocation2] sm:$0xf] (!%p156_p3), %v626_v0  ;;  %556 = vmatprep.subr.mxu0 (!%p156_p3), %v626_v0  ;;  %561 = vmatprep.subr.mxu1 (!%p156_p3), %v626_v0  ;;  %s630_s21 = smov (!%p156_p3), 2   ;;  %v450_v5 = vld [vmem:[%s709_s2] sm:$0x3f] (!%p156_p3) }
   0x8   : > { %558 = vmatprep.mubr.msk.f32.mxu0 (!%p156_p3), %vm627_vm1, %v626_v0  ;;  %563 = vmatprep.mubr.msk.f32.mxu1 (!%p156_p3), %vm627_vm1, %v626_v0  ;;  %vm211_vm2 = vcmask (!%p156_p3), 15360   ;;  %vm213_vm3 = vcmask (!%p156_p3), 31744   ;;  %vm217_vm4 = vcmask (!%p156_p3), 1043456   ;;  %v540_v10 = vld [vmem:[%s708_s1 + $0x8] sm:$0x3f] (!%p156_p3)  ;;  %vm457_vm5 = vcmask (!%p156_p3), 128000  }
   0x9   : > { %600 = vset.pattern.permute.xlu0 (!%p156_p3), %v628_v2  ;;  %v202_v13 = vld [vmem:[%s708_s1] sm:$0x3f] (!%p156_p3)  ;;  %v545_v15 = vld [vmem:[%s708_s1 + $0x10] sm:$0x3f] (!%p156_p3) }
   0xe   : > { %s716_s12 = smov (!%p183_p4, %s616_s12), 1 }
   0xf   : > { %s538_s16 = sshll.u32 %s716_s12, 2  ;;  %s539_s30 = sshll.u32 %s716_s12, 3 }
  0x10   : > { %s189_s19 = scalar_lea.vmem %s707_s0, %s538_s16  ;;  %s196_s6 = scalar_lea.vmem %s710_s3, %s539_s30 }
  0x11   : > { %v198_v1 = vld [vmem:[%s189_s19] sm:$0xf] }
  0x12   : > { %200 = vst.msk [vmem:[#allocation2 + $0x4] sm:$0xf] %vm199_vm0, %v198_v1 }
  0x19   : > { %v201_v3 = vld [vmem:[#allocation2] sm:$0xff] }
  0x1a   : > { %290 = vrot.lane.b32.xlu1 %v201_v3, %s629_s20  ;;  %207 = vrot.lane.b32.xlu0 %v201_v3, %s630_s21  ;;  %v206_v4 = vcombine.high %v201_v3, %v201_v3  ;;  %v370_v14 = vld [vmem:[#allocation2 + $0x4] sm:$0xf] }
  0x1e   : > { %292 = vrot.lane.b32.xlu1 %v206_v4, %s629_s20  ;;  %209 = vrot.lane.b32.xlu0 %v206_v4, %s630_s21 }
  0x22   : > { %453 = vperm.xlu0 %600, %v450_v5  }
  0x8c   : > { %v291_v6 = vpop.permute.xlu1 %290  ;;  %v208_v7 = vpop.permute.xlu0 %207 }
  0x90   : > { %v293_v8 = vpop.permute.xlu1 %292  ;;  %v210_v9 = vpop.permute.xlu0 %209 }
  0x91   : > { %v212_v11 = vsel %vm211_vm2, %v208_v7, %v210_v9  ;;  %v294_v12 = vsel %vm213_vm3, %v291_v6, %v293_v8 }
  0x92   : > { %557 = vmatpush3.msk.msra.mxu0 %vm217_vm4, %v212_v11  ;;  %562 = vmatpush3.msk.msra.mxu1 %vm217_vm4, %v294_v12 }
  0x93   : > { %559 = vmatmul.mubr.msk.f32.vlgmr.msra.gmra.mrb[0].mxu0 %vm213_vm3, %v540_v10  ;;  %566 = vmatprep.subr.mxu0 %v626_v0 }
  0x94   : > { %564 = vmatmul.mubr.msk.f32.vlgmr.msra.gmra.mrb[0].mxu1 %vm213_vm3, %v202_v13  ;;  %567 = vmatpush3.msk.msra.mxu0 %vm217_vm4, %v370_v14 }
  0x95   : > { %568 = vmatprep.mubr.msk.f32.mxu0 %vm627_vm1, %v626_v0 }
  0x97   : > { %569 = vmatmul.mubr.msk.f32.vlgmr.msra.gmra.mrb[2].mxu0 %vm213_vm3, %v545_v15 }
  0xa1   : > { %v454_v22 = vpop.permute.xlu0 %453 }
 0x166   : > { %v286_v16 = vpop.f32.mrb[0].mxu0 }
 0x167   : > { %v560_v17 = vpop.f32.mrb[1].mxu0  ;;  %v366_v18 = vpop.f32.mrb[0].mxu1 }
 0x168   : > { %v367_v19 = vadd.f32 %v366_v18, %v286_v16  ;;  %v565_v20 = vpop.f32.mrb[1].mxu1 }
 0x16a   : > { %v445_v21 = vpop.f32.mrb[2].mxu0 }
 0x16b   : > { %v449_v23 = vadd.f32 %v445_v21, %v367_v19  ;;  %v570_v24 = vpop.f32.mrb[3].mxu0 }
 0x16d   : > { %v456_v25 = vadd.f32 %v454_v22, %v449_v23 }
 0x16f   : > { %458 = vst.msk [vmem:[%s196_s6] sm:$0x3f] %vm457_vm5, %v456_v25 }
 0x170 PF: > { %s13_s14 = sadd.s32 1, %s624_s14   ;;  %s711_s12 = smov %s620_s13 }
 0x171   : > { %p10_p5 = scmp.ge.s32.totalorder %s13_s14, 4   ;;  %s712_s13 = smov %s714_s15 }
 0x173   :  { %12 = sbr.rel (!%p10_p5) target bundleno = 2 (0x2), region = 64 }

</bundles_post_ra>
